<compile_context>
chip_gen: v6e
topology: v6e:2x2x1
jax: 0.10.0
libtpu: 0.0.40
codegen_flags: <defaults>
</compile_context>

<pallas_src>
import collections
import functools
import math

import jax
import jax.numpy as jnp
from jax.experimental import pallas as pl
from jax.experimental.pallas import tpu as pltpu


def _round_up(x, m):
    return (x + m - 1) // m * m


def _cdiv(a, b):
    return (a + b - 1) // b


ClassifierDims = collections.namedtuple(
    "ClassifierDims", ["E", "H", "D", "O", "Ep", "Dp", "Op", "EHp", "k"])


def classifier_kernel(x_ref, g_ref, w1_ref, b1_ref, w2_ref, b2_ref, wo_ref, bo_ref,
                      out_ref):
    """Fused MoE + residual ReLU + output Linear on one batch tile.

    x_ref:  [TB, Dp]  bf16     g_ref:  [TB, Ep]  bf16 (top-k gates, zeros elsewhere)
    w1_ref: [Dp, EHp] bf16     b1_ref: [1, EHp]  f32
    w2_ref: [EHp, Dp] bf16     b2_ref: [Ep, Dp]  bf16
    wo_ref: [Dp, Op]  bf16     bo_ref: [1, Op]   f32
    out_ref:[TB, Op]  f32      (EHp == Ep * H, expert-major column order)
    """
    x_bf = x_ref[...]
    g_bf = g_ref[...]

    # Fused expert first layer: one [TB,Dp]x[Dp,EHp] matmul (all experts at once).
    h = jnp.dot(x_bf, w1_ref[...], preferred_element_type=jnp.float32) + b1_ref[...]
    h = jnp.maximum(h, 0.0)

    # In-kernel gate expansion: grep[:, e*H + j] = gates[:, e].
    # Built with a tiny MXU matmul against an iota-constructed 0/1 matrix; this
    # replaces the f32 [B, E*H] `grep` HBM stream of the previous version.
    ep = g_bf.shape[1]
    ehp = h.shape[1]
    hidden = ehp // ep
    col = jax.lax.broadcasted_iota(jnp.int32, (ep, ehp), 1)
    row = jax.lax.broadcasted_iota(jnp.int32, (ep, ehp), 0)
    d = col - row * hidden
    expand = jnp.where((d >= 0) & (d < hidden), 1.0, 0.0).astype(jnp.bfloat16)
    grep = jnp.dot(g_bf, expand, preferred_element_type=jnp.float32)
    h = h * grep

    # Fused expert second layer + gate-weighted expert biases (gates @ b2_stack).
    y = jnp.dot(h.astype(jnp.bfloat16), w2_ref[...], preferred_element_type=jnp.float32)
    y = y + jnp.dot(g_bf, b2_ref[...], preferred_element_type=jnp.float32)

    # x = relu(moe_out) + x ; out = out_layer(x)
    res = jnp.maximum(y, 0.0) + x_bf.astype(jnp.float32)
    out = jnp.dot(res.astype(jnp.bfloat16), wo_ref[...],
                  preferred_element_type=jnp.float32) + bo_ref[...]
    out_ref[...] = out


def gate_topk(x, wg, k):
    """Noiseless top-k gating (tiny [B,E] compute; fused by XLA inside the jit)."""
    logits = x @ wg                                            # [B, E]
    top_v, top_i = jax.lax.top_k(logits, k)
    top_g = jax.nn.softmax(top_v, axis=-1)                     # [B, k]
    num_expert = logits.shape[-1]
    # one_hot * gate sum (cheaper to fuse than a scatter for small B)
    gates = jnp.sum(jax.nn.one_hot(top_i, num_expert, dtype=jnp.float32)
                    * top_g[..., None], axis=1)                # [B, E]
    load = (gates > 0.0).astype(jnp.float32).sum(axis=0)       # [E]
    return gates, load


def prepare_weights(params, k):
    """One-time fuse / pad / bf16-cast of the expert + output weights."""
    w1, b1, w2, b2 = params["w1"], params["b1"], params["w2"], params["b2"]
    wo, bo = params["wo"], params["bo"]
    E, D, H = w1.shape
    O = wo.shape[1]
    Dp = _round_up(D, 128)
    Op = _round_up(O, 128)
    # Pad the expert count so the fused hidden width Ep*H is a multiple of 128 lanes.
    Ep = _round_up(E, 128 // math.gcd(H, 128))
    EHp = Ep * H
    EH = E * H

    w1_cat = jnp.transpose(w1, (1, 0, 2)).reshape(D, EH)                    # [D, E*H]
    w1_p = jnp.zeros((Dp, EHp), jnp.bfloat16).at[:D, :EH].set(w1_cat.astype(jnp.bfloat16))
    b1_p = jnp.zeros((1, EHp), jnp.float32).at[:, :EH].set(b1.reshape(1, EH))
    w2_p = jnp.zeros((EHp, Dp), jnp.bfloat16).at[:EH, :D].set(
        w2.reshape(EH, D).astype(jnp.bfloat16))
    b2_p = jnp.zeros((Ep, Dp), jnp.bfloat16).at[:E, :D].set(
        b2.reshape(E, D).astype(jnp.bfloat16))
    wo_p = jnp.zeros((Dp, Op), jnp.bfloat16).at[:D, :O].set(wo.astype(jnp.bfloat16))
    bo_p = jnp.zeros((1, Op), jnp.float32).at[:, :O].set(bo)

    fused = dict(w1=w1_p, b1=b1_p, w2=w2_p, b2=b2_p, wo=wo_p, bo=bo_p)
    dims = ClassifierDims(E=E, H=H, D=D, O=O, Ep=Ep, Dp=Dp, Op=Op, EHp=EHp, k=k)
    return fused, dims


def _choose_tb(B):
    # >= 2 grid steps once B >= 16 (both v7x TensorCores busy on the "parallel" axis),
    # tiles capped at 512 rows to amortize per-step overhead, rounded to 8 so the
    # zero-row padding stays minimal.
    n_steps = max(2 if B >= 16 else 1, _cdiv(B, 512))
    return _round_up(_cdiv(B, n_steps), 8)


@functools.partial(jax.jit, static_argnames=("dims", "modality"))
def classifier_forward(params, fused, x, dims, modality):
    gates, load = gate_topk(x, params["wg"][modality], dims.k)
    B, D = x.shape
    E, O = dims.E, dims.O
    Ep, Dp, Op, EHp = dims.Ep, dims.Dp, dims.Op, dims.EHp

    TB = _choose_tb(B)
    B_pad = _round_up(B, TB)

    # Activations streamed in bf16; padded zero rows/cols are exact through the kernel.
    x_p = jnp.zeros((B_pad, Dp), jnp.bfloat16).at[:B, :D].set(x.astype(jnp.bfloat16))
    g_p = jnp.zeros((B_pad, Ep), jnp.bfloat16).at[:B, :E].set(gates.astype(jnp.bfloat16))

    flops = 2 * B_pad * (Dp * EHp + Ep * EHp + EHp * Dp + Ep * Dp + Dp * Op)
    weight_bytes = ((fused["w1"].size + fused["w2"].size + fused["b2"].size
                     + fused["wo"].size) * 2
                    + (fused["b1"].size + fused["bo"].size) * 4)
    bytes_accessed = x_p.size * 2 + g_p.size * 2 + B_pad * Op * 4 + weight_bytes
    # Actual VMEM need: resident weights + double-buffered activation tiles (+ slack).
    tile_bytes = TB * (Dp * 2 + Ep * 2 + Op * 4)
    vmem_limit = int(min(64 * 1024 * 1024,
                         max(8 * 1024 * 1024, 4 * (2 * weight_bytes + 2 * tile_bytes))))

    out_p = pl.pallas_call(
        classifier_kernel,
        out_shape=jax.ShapeDtypeStruct((B_pad, Op), jnp.float32),
        grid=(B_pad // TB,),
        in_specs=[
            pl.BlockSpec((TB, Dp), lambda i: (i, 0)),    # x tile (bf16)
            pl.BlockSpec((TB, Ep), lambda i: (i, 0)),    # gates tile (bf16)
            pl.BlockSpec((Dp, EHp), lambda i: (0, 0)),   # W1_cat   (resident)
            pl.BlockSpec((1, EHp), lambda i: (0, 0)),    # b1_cat   (resident)
            pl.BlockSpec((EHp, Dp), lambda i: (0, 0)),   # W2_cat   (resident)
            pl.BlockSpec((Ep, Dp), lambda i: (0, 0)),    # b2_stack (resident)
            pl.BlockSpec((Dp, Op), lambda i: (0, 0)),    # Wo       (resident)
            pl.BlockSpec((1, Op), lambda i: (0, 0)),     # bo       (resident)
        ],
        out_specs=pl.BlockSpec((TB, Op), lambda i: (i, 0)),
        compiler_params=pltpu.CompilerParams(
            dimension_semantics=("parallel",),
            vmem_limit_bytes=vmem_limit),
        cost_estimate=pl.CostEstimate(flops=flops, transcendentals=0,
                                      bytes_accessed=bytes_accessed),
    )(x_p, g_p, fused["w1"], fused["b1"], fused["w2"], fused["b2"],
      fused["wo"], fused["bo"])

    return out_p[:B, :O], gates, load


def reference_forward(params, x, modality, k):
    """Pure-JAX f32 reference of the same (inferred) semantics."""
    gates, load = gate_topk(x, params["wg"][modality], k)
    num_expert = params["w1"].shape[0]
    acc = jnp.zeros_like(x)
    for e in range(num_expert):
        h = jnp.maximum(x @ params["w1"][e] + params["b1"][e], 0.0)
        y = h @ params["w2"][e] + params["b2"][e]
        acc = acc + gates[:, e:e + 1] * y
    res = jnp.maximum(acc, 0.0) + x
    return res @ params["wo"] + params["bo"], gates, load


def init_params(key, in_dim, out_dim, num_expert, num_mod):
    hidden = in_dim // 4
    ks = jax.random.split(key, 7)
    s_in = 1.0 / jnp.sqrt(in_dim)
    s_h = 1.0 / jnp.sqrt(hidden)
    return {
        # gating networks, one per modality: [num_mod, D, E]
        "wg": jax.random.normal(ks[0], (num_mod, in_dim, num_expert), jnp.float32) * s_in,
        # expert MLPs
        "w1": jax.random.normal(ks[1], (num_expert, in_dim, hidden), jnp.float32) * s_in,
        "b1": jax.random.normal(ks[2], (num_expert, 1, hidden), jnp.float32) * 0.01,
        "w2": jax.random.normal(ks[3], (num_expert, hidden, in_dim), jnp.float32) * s_h,
        "b2": jax.random.normal(ks[4], (num_expert, 1, in_dim), jnp.float32) * 0.01,
        # output layer
        "wo": jax.random.normal(ks[5], (in_dim, out_dim), jnp.float32) * s_in,
        "bo": jax.random.normal(ks[6], (1, out_dim), jnp.float32) * 0.01,
    }


if __name__ == "__main__":
    B, in_dim, out_dim = 8, 64, 32
    num_expert, num_mod, k = 16, 2, 12
    modality = 0

    key = jax.random.PRNGKey(0)
    pkey, xkey = jax.random.split(key)
    params = init_params(pkey, in_dim, out_dim, num_expert, num_mod)
    fused, dims = prepare_weights(params, k)
    x = jax.random.normal(xkey, (B, in_dim), jnp.float32)

    out, gates, load = classifier_forward(params, fused, x, dims=dims, modality=modality)
    jax.block_until_ready((out, gates, load))

    assert out.shape == (B, out_dim)
    assert gates.shape == (B, num_expert)
    assert load.shape == (num_expert,)

    # Numerical sanity check against the f32 reference (bf16 weight/activation tolerance).
    ref_out, ref_gates, ref_load = reference_forward(params, x, modality, k)
    max_err = float(jnp.max(jnp.abs(out - ref_out)))
    assert max_err < 0.1, f"max abs error too large: {max_err}"
    assert float(jnp.max(jnp.abs(gates - ref_gates))) < 1e-5
    assert float(jnp.max(jnp.abs(load - ref_load))) < 1e-5

    print("KERNEL_OK")
</pallas_src>

<mosaic_0001>
module attributes {stable_mosaic.version = 11 : i64} {
  func.func @classifier_kernel(%arg0: i32, %arg1: memref<8x128xbf16, #tpu.memory_space<vmem>>, %arg2: memref<8x16xbf16, #tpu.memory_space<vmem>>, %arg3: memref<128x256xbf16, #tpu.memory_space<vmem>>, %arg4: memref<1x256xf32, #tpu.memory_space<vmem>>, %arg5: memref<256x128xbf16, #tpu.memory_space<vmem>>, %arg6: memref<16x128xbf16, #tpu.memory_space<vmem>>, %arg7: memref<128x128xbf16, #tpu.memory_space<vmem>>, %arg8: memref<1x128xf32, #tpu.memory_space<vmem>>, %arg9: memref<8x128xf32, #tpu.memory_space<vmem>>) attributes {dimension_semantics = [#tpu.dimension_semantics<parallel>], iteration_bounds = array<i64: 1>, scalar_prefetch = 0 : i64, scratch_operands = 0 : i64, tpu.core_type = #tpu.core_type<tc>, window_params = [{transform_indices = @transform_0, window_bounds = array<i64: 8, 128>}, {transform_indices = @transform_1, window_bounds = array<i64: 8, 16>}, {pipeline_mode = #tpu.pipeline_mode<synchronous>, transform_indices = @transform_2, window_bounds = array<i64: 128, 256>}, {pipeline_mode = #tpu.pipeline_mode<synchronous>, transform_indices = @transform_3, window_bounds = array<i64: 1, 256>}, {pipeline_mode = #tpu.pipeline_mode<synchronous>, transform_indices = @transform_4, window_bounds = array<i64: 256, 128>}, {pipeline_mode = #tpu.pipeline_mode<synchronous>, transform_indices = @transform_5, window_bounds = array<i64: 16, 128>}, {pipeline_mode = #tpu.pipeline_mode<synchronous>, transform_indices = @transform_6, window_bounds = array<i64: 128, 128>}, {pipeline_mode = #tpu.pipeline_mode<synchronous>, transform_indices = @transform_7, window_bounds = array<i64: 1, 128>}, {transform_indices = @transform_8, window_bounds = array<i64: 8, 128>}]} {
    %c0 = arith.constant 0 : index
    %c0_0 = arith.constant 0 : index
    %0 = vector.load %arg1[%c0, %c0_0] : memref<8x128xbf16, #tpu.memory_space<vmem>>, vector<8x128xbf16>
    %c0_1 = arith.constant 0 : index
    %c0_2 = arith.constant 0 : index
    %1 = vector.load %arg2[%c0_1, %c0_2] : memref<8x16xbf16, #tpu.memory_space<vmem>>, vector<8x16xbf16>
    %c0_3 = arith.constant 0 : index
    %c0_4 = arith.constant 0 : index
    %2 = vector.load %arg3[%c0_3, %c0_4] : memref<128x256xbf16, #tpu.memory_space<vmem>>, vector<128x256xbf16>
    %cst = arith.constant dense<0.000000e+00> : vector<8x256xf32>
    %3 = tpu.matmul %0, %2, %cst {dimension_numbers = #tpu.dot_dimension_numbers<[1], [0], [0], [1], [0, 0, 1, 1], [], []>} : vector<8x128xbf16>, vector<128x256xbf16>, vector<8x256xf32> -> vector<8x256xf32>
    %c0_5 = arith.constant 0 : index
    %c0_6 = arith.constant 0 : index
    %4 = vector.load %arg4[%c0_5, %c0_6] : memref<1x256xf32, #tpu.memory_space<vmem>>, vector<1x256xf32>
    %5 = vector.broadcast %4 : vector<1x256xf32> to vector<8x256xf32>
    %6 = arith.addf %3, %5 : vector<8x256xf32>
    %cst_7 = arith.constant 0.000000e+00 : f32
    %7 = vector.broadcast %cst_7 : f32 to vector<8x256xf32>
    %8 = arith.maximumf %6, %7 : vector<8x256xf32>
    %9 = tpu.iota {dimensions = array<i32: 1>} : vector<16x256xi32>
    %10 = tpu.iota {dimensions = array<i32: 0>} : vector<16x256xi32>
    %c16_i32 = arith.constant 16 : i32
    %11 = vector.broadcast %c16_i32 : i32 to vector<16x256xi32>
    %12 = arith.muli %10, %11 : vector<16x256xi32>
    %13 = arith.subi %9, %12 : vector<16x256xi32>
    %c0_i32 = arith.constant 0 : i32
    %14 = vector.broadcast %c0_i32 : i32 to vector<16x256xi32>
    %15 = arith.cmpi sge, %13, %14 : vector<16x256xi32>
    %c16_i32_8 = arith.constant 16 : i32
    %16 = vector.broadcast %c16_i32_8 : i32 to vector<16x256xi32>
    %17 = arith.cmpi slt, %13, %16 : vector<16x256xi32>
    %18 = arith.andi %15, %17 : vector<16x256xi1>
    %cst_9 = arith.constant 1.000000e+00 : f32
    %cst_10 = arith.constant 0.000000e+00 : f32
    %19 = vector.broadcast %cst_9 : f32 to vector<16x256xf32>
    %20 = vector.broadcast %cst_10 : f32 to vector<16x256xf32>
    %21 = arith.select %18, %19, %20 : vector<16x256xi1>, vector<16x256xf32>
    %22 = arith.truncf %21 : vector<16x256xf32> to vector<16x256xbf16>
    %cst_11 = arith.constant dense<0.000000e+00> : vector<8x256xf32>
    %23 = tpu.matmul %1, %22, %cst_11 {dimension_numbers = #tpu.dot_dimension_numbers<[1], [0], [0], [1], [0, 0, 1, 1], [], []>} : vector<8x16xbf16>, vector<16x256xbf16>, vector<8x256xf32> -> vector<8x256xf32>
    %24 = arith.mulf %8, %23 : vector<8x256xf32>
    %25 = arith.truncf %24 : vector<8x256xf32> to vector<8x256xbf16>
    %c0_12 = arith.constant 0 : index
    %c0_13 = arith.constant 0 : index
    %26 = vector.load %arg5[%c0_12, %c0_13] : memref<256x128xbf16, #tpu.memory_space<vmem>>, vector<256x128xbf16>
    %cst_14 = arith.constant dense<0.000000e+00> : vector<8x128xf32>
    %27 = tpu.matmul %25, %26, %cst_14 {dimension_numbers = #tpu.dot_dimension_numbers<[1], [0], [0], [1], [0, 0, 1, 1], [], []>} : vector<8x256xbf16>, vector<256x128xbf16>, vector<8x128xf32> -> vector<8x128xf32>
    %c0_15 = arith.constant 0 : index
    %c0_16 = arith.constant 0 : index
    %28 = vector.load %arg6[%c0_15, %c0_16] : memref<16x128xbf16, #tpu.memory_space<vmem>>, vector<16x128xbf16>
    %cst_17 = arith.constant dense<0.000000e+00> : vector<8x128xf32>
    %29 = tpu.matmul %1, %28, %cst_17 {dimension_numbers = #tpu.dot_dimension_numbers<[1], [0], [0], [1], [0, 0, 1, 1], [], []>} : vector<8x16xbf16>, vector<16x128xbf16>, vector<8x128xf32> -> vector<8x128xf32>
    %30 = arith.addf %27, %29 : vector<8x128xf32>
    %cst_18 = arith.constant 0.000000e+00 : f32
    %31 = vector.broadcast %cst_18 : f32 to vector<8x128xf32>
    %32 = arith.maximumf %30, %31 : vector<8x128xf32>
    %33 = arith.extf %0 : vector<8x128xbf16> to vector<8x128xf32>
    %34 = arith.addf %32, %33 : vector<8x128xf32>
    %35 = arith.truncf %34 : vector<8x128xf32> to vector<8x128xbf16>
    %c0_19 = arith.constant 0 : index
    %c0_20 = arith.constant 0 : index
    %36 = vector.load %arg7[%c0_19, %c0_20] : memref<128x128xbf16, #tpu.memory_space<vmem>>, vector<128x128xbf16>
    %cst_21 = arith.constant dense<0.000000e+00> : vector<8x128xf32>
    %37 = tpu.matmul %35, %36, %cst_21 {dimension_numbers = #tpu.dot_dimension_numbers<[1], [0], [0], [1], [0, 0, 1, 1], [], []>} : vector<8x128xbf16>, vector<128x128xbf16>, vector<8x128xf32> -> vector<8x128xf32>
    %c0_22 = arith.constant 0 : index
    %c0_23 = arith.constant 0 : index
    %38 = vector.load %arg8[%c0_22, %c0_23] : memref<1x128xf32, #tpu.memory_space<vmem>>, vector<1x128xf32>
    %39 = vector.broadcast %38 : vector<1x128xf32> to vector<8x128xf32>
    %40 = arith.addf %37, %39 : vector<8x128xf32>
    %c0_24 = arith.constant 0 : index
    %c0_25 = arith.constant 0 : index
    %41 = vector.load %arg9[%c0_24, %c0_25] : memref<8x128xf32, #tpu.memory_space<vmem>>, vector<8x128xf32>
    tpu.vector_store %arg9[%c0_24, %c0_25], %40 {strides = array<i32>} : memref<8x128xf32, #tpu.memory_space<vmem>>, vector<8x128xf32>,
    return
  }
  func.func @transform_0(%arg0: i32) -> (i32, i32) {
    %c0_i32 = arith.constant 0 : i32
    %c0_i32_0 = arith.constant 0 : i32
    return %arg0, %c0_i32 : i32, i32
  }
  func.func @transform_1(%arg0: i32) -> (i32, i32) {
    %c0_i32 = arith.constant 0 : i32
    %c0_i32_0 = arith.constant 0 : i32
    return %arg0, %c0_i32 : i32, i32
  }
  func.func @transform_2(%arg0: i32) -> (i32, i32) {
    %c0_i32 = arith.constant 0 : i32
    %c0_i32_0 = arith.constant 0 : i32
    %c0_i32_1 = arith.constant 0 : i32
    return %c0_i32, %c0_i32_0 : i32, i32
  }
  func.func @transform_3(%arg0: i32) -> (i32, i32) {
    %c0_i32 = arith.constant 0 : i32
    %c0_i32_0 = arith.constant 0 : i32
    %c0_i32_1 = arith.constant 0 : i32
    return %c0_i32, %c0_i32_0 : i32, i32
  }
  func.func @transform_4(%arg0: i32) -> (i32, i32) {
    %c0_i32 = arith.constant 0 : i32
    %c0_i32_0 = arith.constant 0 : i32
    %c0_i32_1 = arith.constant 0 : i32
    return %c0_i32, %c0_i32_0 : i32, i32
  }
  func.func @transform_5(%arg0: i32) -> (i32, i32) {
    %c0_i32 = arith.constant 0 : i32
    %c0_i32_0 = arith.constant 0 : i32
    %c0_i32_1 = arith.constant 0 : i32
    return %c0_i32, %c0_i32_0 : i32, i32
  }
  func.func @transform_6(%arg0: i32) -> (i32, i32) {
    %c0_i32 = arith.constant 0 : i32
    %c0_i32_0 = arith.constant 0 : i32
    %c0_i32_1 = arith.constant 0 : i32
    return %c0_i32, %c0_i32_0 : i32, i32
  }
  func.func @transform_7(%arg0: i32) -> (i32, i32) {
    %c0_i32 = arith.constant 0 : i32
    %c0_i32_0 = arith.constant 0 : i32
    %c0_i32_1 = arith.constant 0 : i32
    return %c0_i32, %c0_i32_0 : i32, i32
  }
  func.func @transform_8(%arg0: i32) -> (i32, i32) {
    %c0_i32 = arith.constant 0 : i32
    %c0_i32_0 = arith.constant 0 : i32
    return %arg0, %c0_i32 : i32, i32
  }
}

</mosaic_0001>

<bundles_post_ra>
// kernel: classifier_forward.1
= control target key start
LH: loop header
LB: loop body
LE: loop exit
PB: predicated region body
PF: predicated region fallthrough
CT: control target
= control target key end

     0   :  { %13 = vsyncpa [#allocation3], 0  ;;  %s1003_s0 = inlined_call_operand.vmem [shape: bf16[8,128], index: 0, kind: input, shape index: {}]   ;;  %s1004_s1 = inlined_call_operand.vmem [shape: bf16[8,16], index: 1, kind: input, shape index: {}]   ;;  %s1005_s2 = inlined_call_operand.vmem [shape: bf16[128,256], index: 2, kind: input, shape index: {}]   ;;  %s1006_s3 = inlined_call_operand.vmem [shape: f32[1,256], index: 3, kind: input, shape index: {}]   ;;  %s1007_s4 = inlined_call_operand.hbm [shape: bf16[256,128], index: 4, kind: input, shape index: {}]   ;;  %s1008_s5 = inlined_call_operand.vmem [shape: bf16[16,128], index: 5, kind: input, shape index: {}]   ;;  %s1009_s6 = inlined_call_operand.vmem [shape: bf16[128,128], index: 6, kind: input, shape index: {}]   ;;  %s1010_s7 = inlined_call_operand.vmem [shape: f32[1,128], index: 7, kind: input, shape index: {}]   ;;  %s1011_s8 = inlined_call_operand.hbm [shape: f32[8,128], index: 8, kind: output, shape index: {}]  }
   0x1   :  { %14 = vsyncpa [#allocation4], 0  ;;  %s832_s27 = smov [#allocation2]  }
   0x2   :  { %s28_s28 = sshll.u32 %s832_s27, 4  ;;  %s29_s28 = int_to_ptr.vmem [resolvable:$true] %s28_s28 }
   0x3   :  { %s796_s29 = scalar_lea.vmem %s29_s28, 2048  ;;  %p801_p1 = scmp.lt.s32.totalorder %s29_s28, %s29_s28 }
   0x4   :  { %p797_p0 = scmp.ne.s32.totalorder %s29_s28, %s796_s29  ;;  %p802_p2 = scmp.lt.s32.totalorder %s796_s29, %s796_s29 }
   0x6   :  { %p803_p3 = por %p802_p2, %p801_p1 }
   0x8   :  { %p804_p4 = pnand %p803_p3, %p797_p0 }
   0xa   :  { %807 = shalt.err (!%p804_p4)
}
   0xb   :  { %s833_s30 = smov 64   ;;  %s834_s9 = smov 4  }
   0xc   :  { %34 = dma.hbm_to_vmem [thread:$0]  %s1007_s4, 2048, %s29_s28, [#allocation3], %s833_s30, %s833_s30, %s834_s9  }
   0xd   :  { %828 = dma.done.wait [#allocation3], 2048  }
   0xe   :  { %829 = vsyncadd [#allocation3], 4294965248  ;;  %v65_v0 = vlaneseq  ;;  %v835_v1 = vmov 0   ;;  %v739_v8 = vld [vmem:[%s1005_s2 + $0x74] ss:$8 sps:$4 sm:$0xff]   ;;  %vm228_vm14 = vcmask 130048  }
   0xf   :  { %264 = vmatprep.mubr.bf16.mxu1 %v835_v1  ;;  %187 = vmatprep.mubr.bf16.mxu0 %v835_v1  ;;  %v741_v9 = vld [vmem:[%s1005_s2 + $0x70] ss:$8 sps:$4 sm:$0xff]   ;;  %v742_v10 = vld [vmem:[%s1005_s2 + $0x64] ss:$8 sps:$4 sm:$0xff]   ;;  %v744_v12 = vld [vmem:[%s1005_s2 + $0x60] ss:$8 sps:$4 sm:$0xff]  }
  0x10   :  { %v888_v2 = vshrl.u32 %v65_v0, 7  ;;  %v199_v3 = vand.u32 127, %v65_v0  ;;  %155 = vmatprep.subr.bf16.mxu0 %v739_v8  ;;  %v745_v14 = vld [vmem:[%s1005_s2 + $0x54] ss:$8 sps:$4 sm:$0xff]   ;;  %v747_v17 = vld [vmem:[%s1005_s2 + $0x50] ss:$8 sps:$4 sm:$0xff]  }
  0x11   :  { %156 = vmatpush1.bf16.msra.mxu0 %v741_v9  ;;  %v748_v18 = vld [vmem:[%s1005_s2 + $0x44] ss:$8 sps:$4 sm:$0xff]   ;;  %v750_v19 = vld [vmem:[%s1005_s2 + $0x40] ss:$8 sps:$4 sm:$0xff]   ;;  %v751_v20 = vld [vmem:[%s1005_s2 + $0x34] ss:$8 sps:$4 sm:$0xff]  }
  0x12   :  { %v203_v4 = vadd.s32 8, %v888_v2  ;;  %v200_v5 = vadd.s32 128, %v199_v3  ;;  %v204_v6 = vmul.u32 16, %v888_v2  ;;  %157 = vmatprep.subr.bf16.mxu0 %v742_v10  ;;  %v836_v21 = vmov 1.0|1.0   ;;  %v763_v24 = vld [vmem:[%s1008_s5] sm:$0xff]  }
  0x13   :  { %v753_v22 = vld [vmem:[%s1005_s2 + $0x30] ss:$8 sps:$4 sm:$0xff]   ;;  %v46_v23 = vld [vmem:[%s1004_s1] sm:$0xf]  ;;  %v754_v25 = vld [vmem:[%s1005_s2 + $0x24] ss:$8 sps:$4 sm:$0xff]  }
  0x14   :  { %v205_v7 = vmul.u32 16, %v203_v4  ;;  %v207_v11 = vsub.s32 %v200_v5, %v204_v6  ;;  %v206_v15 = vsub.s32 %v199_v3, %v204_v6  ;;  %v837_v26 = vmov 0.0   ;;  %v764_v27 = vld [vmem:[#allocation2 + $0x78] sm:$0xff]   ;;  %v756_v28 = vld [vmem:[%s1005_s2 + $0x20] ss:$8 sps:$4 sm:$0xff]   ;;  %v766_v33 = vld [vmem:[#allocation2 + $0x70] sm:$0xff]  }
  0x15   :  { %158 = vmatpush1.bf16.msra.mxu0 %v744_v12  ;;  %v757_v29 = vld [vmem:[%s1005_s2 + $0x14] ss:$8 sps:$4 sm:$0xff]   ;;  %vm838_vm15 = vmmov 0   ;;  %v759_v30 = vld [vmem:[%s1005_s2 + $0x10] ss:$8 sps:$4 sm:$0xff]   ;;  %v768_v36 = vld [vmem:[#allocation2 + $0x68] sm:$0xff]  }
  0x16   :  { %v209_v13 = vsub.s32 %v200_v5, %v205_v7  ;;  %vm211_vm0 = vcmp.ge.s32.totalorder %v207_v11, 0  ;;  %vm215_vm1 = vcmp.lt.s32.totalorder %v207_v11, 16  ;;  %v208_v16 = vsub.s32 %v199_v3, %v205_v7  ;;  %159 = vmatprep.subr.bf16.mxu0 %v745_v14  ;;  %v760_v31 = vld [vmem:[%s1005_s2 + $0x4] ss:$8 sps:$4 sm:$0xff]   ;;  %v765_v32 = vld [vmem:[#allocation2 + $0x38] sm:$0xff]   ;;  %v767_v35 = vld [vmem:[#allocation2 + $0x30] sm:$0xff]  }
  0x17   :  { %vm219_vm4 = vmand %vm211_vm0, %vm215_vm1  ;;  %vm210_vm5 = vcmp.ge.s32.totalorder %v206_v15, 0  ;;  %vm214_vm6 = vcmp.lt.s32.totalorder %v206_v15, 16  ;;  %v762_v34 = vld [vmem:[%s1005_s2] ss:$8 sps:$4 sm:$0xff]   ;;  %v772_v41 = vld [vmem:[#allocation2 + $0x58] sm:$0xff]   ;;  %v67_v59 = vsub.s32 0, %v888_v2 }
  0x18   :  { %vm213_vm2 = vcmp.ge.s32.totalorder %v209_v13, 0  ;;  %vm217_vm3 = vcmp.lt.s32.totalorder %v209_v13, 16  ;;  %vm212_vm8 = vcmp.ge.s32.totalorder %v208_v16, 0  ;;  %vm216_vm9 = vcmp.lt.s32.totalorder %v208_v16, 16  ;;  %vm218_vm11 = vmand %vm210_vm5, %vm214_vm6  ;;  %v954_v37 = vld [vmem:[%s1003_s0] sm:$0xf] }
  0x19   :  { %vm221_vm7 = vmand %vm213_vm2, %vm217_vm3  ;;  %160 = vmatpush1.bf16.msra.mxu0 %v747_v17  ;;  %v769_v38 = vld [vmem:[#allocation2 + $0x28] sm:$0xff]   ;;  %v770_v39 = vld [vmem:[#allocation2 + $0x60] sm:$0xff]   ;;  %v71_v62 = vsub.s32 1, %v888_v2  ;;  %s839_s16 = smov [#allocation5]  }
  0x1a   :  { %vm640_vm10 = vmpackc.low %vm221_vm7, %vm219_vm4  ;;  %161 = vmatprep.subr.bf16.mxu0 %v748_v18  ;;  %v771_v40 = vld [vmem:[#allocation2 + $0x20] sm:$0xff]   ;;  %v773_v42 = vld [vmem:[#allocation2 + $0x18] sm:$0xff]   ;;  %s615_s17 = sshll.u32 %s839_s16, 4  ;;  %s616_s17 = int_to_ptr.vmem [resolvable:$true] %s615_s17 }
  0x1b   :  { %641 = vmatprep.subr.msk.bf16.mxu1 %vm640_vm10, %v836_v21  ;;  %vm220_vm12 = vmand %vm212_vm8, %vm216_vm9  ;;  %v774_v43 = vld [vmem:[#allocation2 + $0x50] sm:$0xff]   ;;  %v776_v45 = vld [vmem:[#allocation2 + $0x48] sm:$0xff]   ;;  %p813_p6 = scmp.lt.s32.totalorder %s616_s17, %s616_s17 }
  0x1c   :  { %vm642_vm13 = vmpackc.low %vm220_vm12, %vm218_vm11  ;;  %v775_v44 = vld [vmem:[#allocation2 + $0x10] sm:$0xff]   ;;  %v777_v46 = vld [vmem:[#allocation2 + $0x8] sm:$0xff]  }
  0x1d   :  { %162 = vmatpush1.bf16.msra.mxu0 %v750_v19  ;;  %643 = vmatpush1.bf16.msk.msra.mxu1 %vm642_vm13, %v836_v21  ;;  %v778_v47 = vld [vmem:[#allocation2 + $0x40] sm:$0xff]   ;;  %v780_v49 = vld [vmem:[%s1009_s6 + $0x38] sm:$0xff]   ;;  %v781_v50 = vld [vmem:[%s1009_s6 + $0x30] sm:$0xff]  }
  0x1e   :  { %163 = vmatprep.subr.bf16.mxu0 %v751_v20  ;;  %705 = vmatprep.subr.bf16.mxu1 %v837_v26  ;;  %v779_v48 = vld [vmem:[#allocation2] sm:$0xff]   ;;  %v782_v51 = vld [vmem:[%s1009_s6 + $0x28] sm:$0xff]   ;;  %v784_v53 = vld [vmem:[%s1009_s6 + $0x18] sm:$0xff]  }
  0x1f   :  { %v783_v52 = vld [vmem:[%s1009_s6 + $0x20] sm:$0xff]   ;;  %v785_v2 = vld [vmem:[%s1009_s6 + $0x10] sm:$0xff]   ;;  %v786_v16 = vld [vmem:[%s1009_s6 + $0x8] sm:$0xff]  }
  0x20   :  { %644 = vmatmul.mubr.msk.bf16.vlgmr.msra.gmra.mxu1 %vm228_vm14, %v46_v23  ;;  %v63_v60 = vld [vmem:[%s1006_s3] sm:$0x3] }
  0x21   :  { %164 = vmatpush1.bf16.msra.mxu0 %v753_v22  ;;  %706 = vmatpush3.bf16.msra.mxu1 %v763_v24  ;;  %v68_v0 = vrot.slane %v63_v60, %v67_v59  ;;  %v72_v3 = vrot.slane %v63_v60, %v71_v62  ;;  %v787_v17 = vld [vmem:[%s1009_s6] sm:$0xff]   ;;  %v494_v22 = vunpack.c.l.bf16 %v954_v37  ;;  %s808_s6 = scalar_lea.vmem %s616_s17, 128 }
  0x22   :  { %165 = vmatprep.subr.bf16.mxu0 %v754_v25  ;;  %707 = vmatprep.mubr.msk.bf16.mxu1 %vm838_vm15, %v837_v26  ;;  %p809_p5 = scmp.ne.s32.totalorder %s616_s17, %s808_s6  ;;  %p814_p7 = scmp.lt.s32.totalorder %s808_s6, %s808_s6 }
  0x23   :  { %674 = vmatprep.subr.bf16.mxu1 %v764_v27 }
  0x24   :  { %p815_p8 = por %p814_p7, %p813_p6 }
  0x25   :  { %166 = vmatpush1.bf16.msra.mxu0 %v756_v28 }
  0x26   :  { %167 = vmatprep.subr.bf16.mxu0 %v757_v29  ;;  %p816_p9 = pnand %p815_p8, %p809_p5 }
  0x28   :  { %708 = vmatmul.mubr.msk.bf16.vlgmr.msra.gmra.mxu1 %vm228_vm14, %v46_v23 }
  0x29   :  { %168 = vmatpush1.bf16.msra.mxu0 %v759_v30  ;;  %675 = vmatpush3.bf16.msra.mxu1 %v765_v32 }
  0x2a   :  { %169 = vmatprep.subr.bf16.mxu0 %v760_v31  ;;  %676 = vmatprep.subr.bf16.mxu1 %v766_v33 }
  0x2d   :  { %170 = vmatpush1.bf16.msra.mxu0 %v762_v34  ;;  %677 = vmatpush3.bf16.msra.mxu1 %v767_v35 }
  0x2e   :  { %678 = vmatprep.subr.bf16.mxu1 %v768_v36  ;;  %711 = vmatprep.subr.bf16.mxu0 %v837_v26 }
  0x30   :  { %188 = vmatmul.mubr.bf16.vlgmr.msra.gmra.mxu0 %v954_v37 }
  0x31   :  { %679 = vmatpush3.bf16.msra.mxu1 %v769_v38  ;;  %727 = vmatprep.mubr.msk.bf16.mxu0 %vm838_vm15, %v837_v26 }
  0x32   :  { %680 = vmatprep.subr.bf16.mxu1 %v770_v39  ;;  %712 = vmatpush3.bf16.msra.mxu0 %v780_v49 }
  0x33   :  { %713 = vmatprep.subr.bf16.mxu0 %v837_v26 }
  0x35   :  { %681 = vmatpush3.bf16.msra.mxu1 %v771_v40 }
  0x36   :  { %682 = vmatprep.subr.bf16.mxu1 %v772_v41  ;;  %714 = vmatpush3.bf16.msra.mxu0 %v781_v50 }
  0x37   :  { %715 = vmatprep.subr.bf16.mxu0 %v837_v26 }
  0x39   :  { %683 = vmatpush3.bf16.msra.mxu1 %v773_v42 }
  0x3a   :  { %684 = vmatprep.subr.bf16.mxu1 %v774_v43  ;;  %716 = vmatpush3.bf16.msra.mxu0 %v782_v51 }
  0x3b   :  { %717 = vmatprep.subr.bf16.mxu0 %v837_v26 }
  0x3d   :  { %685 = vmatpush3.bf16.msra.mxu1 %v775_v44 }
  0x3e   :  { %686 = vmatprep.subr.bf16.mxu1 %v776_v45  ;;  %718 = vmatpush3.bf16.msra.mxu0 %v783_v52 }
  0x3f   :  { %719 = vmatprep.subr.bf16.mxu0 %v837_v26 }
  0x41   :  { %687 = vmatpush3.bf16.msra.mxu1 %v777_v46 }
  0x42   :  { %688 = vmatprep.subr.bf16.mxu1 %v778_v47  ;;  %720 = vmatpush3.bf16.msra.mxu0 %v784_v53 }
  0x43   :  { %721 = vmatprep.subr.bf16.mxu0 %v837_v26 }
  0x45   :  { %689 = vmatpush3.bf16.msra.mxu1 %v779_v48 }
  0x46   :  { %722 = vmatpush3.bf16.msra.mxu0 %v785_v2 }
  0x47   :  { %723 = vmatprep.subr.bf16.mxu0 %v837_v26 }
  0x4a   :  { %724 = vmatpush3.bf16.msra.mxu0 %v786_v16 }
  0x4b   :  { %725 = vmatprep.subr.bf16.mxu0 %v837_v26  ;;  %v663_v26 = vld [vmem:[%s1010_s7] ss:$0 sm:$0xff] }
  0x4e   :  { %726 = vmatpush3.bf16.msra.mxu0 %v787_v17 }
  0xe0   :  { %v266_v54 = vpop.f32.mrf.mxu1 }
  0xe2   :  { %v268_v55 = vpop.f32.mrf.mxu1 }
  0xe4   :  { %v270_v56 = vpop.f32.mrf.mxu1 }
  0xe6   :  { %v271_v57 = vpop.f32.mrf.mxu1 }
  0xe8   :  { %v351_v58 = vpop.f32.mrf.mxu1 }
  0xea   :  { %v709_v61 = vpop.f32.mrf.mxu1 }
  0xec   :  { %v354_v63 = vpop.f32.mrf.mxu1 }
  0xee   :  { %v710_v1 = vpop.f32.mrf.mxu1 }
  0xf0   :  { %v189_v4 = vpop.f32.mrf.mxu0 }
  0xf1   :  { %v190_v5 = vadd.f32 %v189_v4, %v68_v0 }
  0xf2   :  { %v191_v6 = vpop.f32.mrf.mxu0 }
  0xf3   :  { %v196_v7 = vmax.f32 %v190_v5, 0.0  ;;  %v192_v8 = vadd.f32 %v191_v6, %v72_v3 }
  0xf4   :  { %v193_v9 = vpop.f32.mrf.mxu0 }
  0xf5   :  { %v197_v10 = vmax.f32 %v192_v8, 0.0  ;;  %v273_v11 = vmul.f32 %v266_v54, %v196_v7 }
  0xf6   :  { %v194_v12 = vpop.f32.mrf.mxu0 }
  0xf7   :  { %v274_v13 = vmul.f32 %v268_v55, %v197_v10  ;;  %v275_v15 = vpack.c.bf16 %v273_v11, %v273_v11 }
  0xf9   :  { %v276_v14 = vpack.c.bf16 %v274_v13, %v274_v13 }
  0xfb   :  { %485 = vmatprep.mubr.bf16.mxu1 %v276_v14 }
  0xfc   :  { %486 = vmatmul.mubr.bf16.vlgmr.msra.gmra.mxu1 %v275_v15 }
 0x1bc   :  { %v690_v18 = vpop.f32.mrf.mxu1 }
 0x1be   :  { %v691_v19 = vpop.f32.mrf.mxu1 }
 0x1bf   :  { %v692_v20 = vadd.f32 %v691_v19, %v690_v18 }
 0x1c0   :  { %v693_v21 = vpop.f32.mrf.mxu1 }
 0x1c1   :  { %v488_v23 = vadd.f32 %v692_v20, %v351_v58 }
 0x1c2   :  { %v694_v24 = vpop.f32.mrf.mxu1 }
 0x1c3   :  { %v493_v25 = vmax.f32 %v488_v23, 0.0 }
 0x1c5   :  { %v495_v27 = vadd.f32 %v494_v22, %v493_v25 }
 0x1c7   :  { %v496_v28 = vpack.c.bf16 %v495_v27, %v495_v27 }
 0x1c9   :  { %728 = vmatmul.mubr.bf16.vlgmr.msra.gmra.mxu0 %v496_v28 }
 0x289   :  { %v602_v29 = vpop.f32.mrf.mxu0 }
 0x28a   :  { %v603_v30 = vadd.f32 %v663_v26, %v602_v29 }
 0x28b   :  { %v729_v31 = vpop.f32.mrf.mxu0 }
 0x28c   :  { %608 = vst [vmem:[#allocation5] sm:$0xff] %v603_v30 }
 0x28d   :  { %v605_v32 = vpop.f32.mrf.mxu0 }
 0x28e   :  { %819 = shalt.err (!%p816_p9)
}
 0x28f   :  { %618 = dma.vmem_to_hbm [thread:$0]  %s616_s17, 128, %s1011_s8, [#allocation4]   ;;  %v730_v33 = vpop.f32.mrf.mxu0 }
 0x290   :  { %830 = dma.done.wait [#allocation4], 128  }
 0x291   :  { %831 = vsyncadd [#allocation4], 4294967168 }
 0x292   :  { %622 = vsyncpa [#allocation3], 1 }
 0x293   :  { %623 = vsyncpa [#allocation4], 1 }

</bundles_post_ra>
